<compile_context>
chip_gen: v7x
topology: tpu7x:2x2x1
jax: 0.10.0
libtpu: 0.0.40
codegen_flags: <defaults>
</compile_context>

<pallas_src>
import jax
import jax.numpy as jnp
from jax.experimental import pallas as pl
from jax.experimental.pallas import tpu as pltpu

_ACC_ROWS = 8  # one sublane group; accumulator is (8, F)


def _round_up(x: int, m: int) -> int:
    return ((x + m - 1) // m) * m


def _make_kernel(total_frames: int):
    inv_n = 1.0 / float(total_frames)

    def kernel(frames_ref, w_ref, b_ref, out_ref, acc_ref):
        # grid = (B, S_pad // seq_tile); axis 1 is the sequence reduction axis.
        s = pl.program_id(1)

        @pl.when(s == 0)
        def _():
            acc_ref[...] = jnp.zeros_like(acc_ref)

        x = frames_ref[0].astype(jnp.float32)          # (seq_tile, F)
        ts, f = x.shape
        # Pure VPU partial reduction: element-wise adds of (8, F) vreg rows.
        # No per-step XLU reduce, no per-step matmul, no per-step bias.
        acc_ref[...] += jnp.sum(x.reshape(ts // _ACC_ROWS, _ACC_ROWS, f), axis=0)

        @pl.when(s == pl.num_programs(1) - 1)
        def _():
            # Epilogue (once per batch): one small MXU matmul, one cross-sublane
            # reduce, scale by 1/S and add bias.
            # mean_s(x_s @ W + b) == (mean_s x_s) @ W + b
            h = jnp.dot(acc_ref[...], w_ref[...],
                        preferred_element_type=jnp.float32)        # (8, H)
            h = jnp.sum(h, axis=0, keepdims=True) * inv_n + b_ref[...]
            out_ref[0] = h.astype(out_ref.dtype)

    return kernel


def musicgen_mean_aggregate(wav, w, b, *, frame_size=128, seq_tile=512):
    """wav: [B, C, L] (C squeezed, mirroring the torch module); returns [B, H]."""
    B, C, L = wav.shape
    assert C == 1, "channel dim is squeezed, mirroring `w.squeeze()` in the module"
    F, H = w.shape
    assert F == frame_size and L % F == 0
    assert F % 128 == 0 and H % 128 == 0, "lane dims must be 128-aligned"

    S = L // F                                   # number of "hidden state" frames

    # Clamp / align the sequence tile: multiple of 8 sublanes, no bigger than S.
    seq_tile = max(_ACC_ROWS, min(seq_tile, _round_up(S, _ACC_ROWS)))
    seq_tile = _round_up(seq_tile, _ACC_ROWS)
    S_pad = _round_up(S, seq_tile)

    frames = wav.reshape(B, S, F)                # glue reshape (plain JAX)
    if S_pad != S:
        # zero padding is exact: padded frames contribute 0 to the sum; we still
        # divide by the true S inside the kernel.
        frames = jnp.pad(frames, ((0, 0), (0, S_pad - S), (0, 0)))
    bias = b.reshape(1, H).astype(jnp.float32)

    n_seq_steps = S_pad // seq_tile
    itemsize = jnp.dtype(frames.dtype).itemsize
    # Double-buffered frame tiles + resident W/bias/out/acc, with headroom.
    vmem_est = (2 * seq_tile * F * itemsize + 2 * F * H * 4 + 4 * H * 4
                + _ACC_ROWS * F * 4 + (1 << 20))
    vmem_limit = min(64 * 1024 * 1024, max(32 * 1024 * 1024, 2 * vmem_est))

    out = pl.pallas_call(
        _make_kernel(S),
        out_shape=jax.ShapeDtypeStruct((B, 1, H), jnp.float32),
        grid_spec=pltpu.PrefetchScalarGridSpec(
            num_scalar_prefetch=0,
            grid=(B, n_seq_steps),
            in_specs=[
                # big, lane-dense streaming tile of frames
                pl.BlockSpec((1, seq_tile, F), lambda bi, si: (bi, si, 0)),
                # projection weights + bias stay resident (constant block index)
                pl.BlockSpec((F, H), lambda bi, si: (0, 0)),
                pl.BlockSpec((1, H), lambda bi, si: (0, 0)),
            ],
            out_specs=pl.BlockSpec((1, 1, H), lambda bi, si: (bi, 0, 0)),
            scratch_shapes=[pltpu.VMEM((_ACC_ROWS, F), jnp.float32)],
        ),
        compiler_params=pltpu.CompilerParams(
            dimension_semantics=("parallel", "arbitrary"),
            vmem_limit_bytes=vmem_limit,
        ),
    )(frames, w, bias)

    return out[:, 0, :]                          # [B, H]


def reference_mean_aggregate(wav, w, b, *, frame_size=128):
    """Pure-JAX reference: hidden = frames @ W + b ; mean over seq (dim=-2)."""
    B, C, L = wav.shape
    F, H = w.shape
    frames = wav.reshape(B, L // F, F)
    hidden = frames.astype(jnp.float32) @ w.astype(jnp.float32) + b[None, None, :]
    return hidden.mean(axis=-2)                  # aggregate(..., 'mean')


if __name__ == "__main__":
    key = jax.random.PRNGKey(0)
    k_wav, k_w, k_b = jax.random.split(key, 3)

    B, C = 2, 1
    frame_size = 128                             # synthetic frame / feature dim
    S = 1024                                     # number of sequence frames
    H = 256                                      # hidden dim (stand-in for 1024)
    L = S * frame_size

    wav = jax.random.normal(k_wav, (B, C, L), dtype=jnp.float32)
    w = (jax.random.normal(k_w, (frame_size, H), dtype=jnp.float32)
         * (1.0 / jnp.sqrt(frame_size)))
    b = jax.random.normal(k_b, (H,), dtype=jnp.float32) * 0.01

    out = musicgen_mean_aggregate(wav, w, b, frame_size=frame_size, seq_tile=256)
    out = jax.block_until_ready(out)

    ref = reference_mean_aggregate(wav, w, b, frame_size=frame_size)
    assert out.shape == (B, H)
    assert jnp.allclose(out, ref, atol=1e-4, rtol=1e-3), "mismatch vs reference"

    print("KERNEL_OK")
</pallas_src>

<mosaic_0001>
module attributes {stable_mosaic.version = 11 : i64} {
  func.func @kernel(%arg0: i32, %arg1: i32, %arg2: memref<1x256x128xf32, #tpu.memory_space<vmem>>, %arg3: memref<128x256xf32, #tpu.memory_space<vmem>>, %arg4: memref<1x256xf32, #tpu.memory_space<vmem>>, %arg5: memref<1x1x256xf32, #tpu.memory_space<vmem>>, %arg6: memref<8x128xf32, #tpu.memory_space<vmem>>) attributes {dimension_semantics = [#tpu.dimension_semantics<parallel>, #tpu.dimension_semantics<arbitrary>], iteration_bounds = array<i64: 2, 4>, scalar_prefetch = 0 : i64, scratch_operands = 1 : i64, tpu.core_type = #tpu.core_type<tc>, window_params = [{transform_indices = @transform_0, window_bounds = array<i64: 1, 256, 128>}, {pipeline_mode = #tpu.pipeline_mode<synchronous>, transform_indices = @transform_1, window_bounds = array<i64: 128, 256>}, {pipeline_mode = #tpu.pipeline_mode<synchronous>, transform_indices = @transform_2, window_bounds = array<i64: 1, 256>}, {transform_indices = @transform_3, window_bounds = array<i64: 1, 1, 256>}]} {
    %c0_i32 = arith.constant 0 : i32
    %0 = arith.cmpi eq, %arg1, %c0_i32 : i32
    %1 = arith.extui %0 : i1 to i32
    %c0_i32_0 = arith.constant 0 : i32
    %2 = arith.cmpi ne, %1, %c0_i32_0 : i32
    scf.if %2 {
      %cst_8 = arith.constant 0.000000e+00 : f32
      %13 = vector.broadcast %cst_8 : f32 to vector<8x128xf32>
      %c0_9 = arith.constant 0 : index
      %c0_10 = arith.constant 0 : index
      %14 = vector.load %arg6[%c0_9, %c0_10] : memref<8x128xf32, #tpu.memory_space<vmem>>, vector<8x128xf32>
      tpu.vector_store %arg6[%c0_9, %c0_10], %13 {strides = array<i32>} : memref<8x128xf32, #tpu.memory_space<vmem>>, vector<8x128xf32>,
    } else {
    }
    %c0 = arith.constant 0 : index
    %c0_1 = arith.constant 0 : index
    %c0_2 = arith.constant 0 : index
    %3 = vector.load %arg2[%c0, %c0_1, %c0_2] : memref<1x256x128xf32, #tpu.memory_space<vmem>>, vector<1x256x128xf32>
    %4 = vector.shape_cast %3 : vector<1x256x128xf32> to vector<256x128xf32>
    %c0_3 = arith.constant 0 : index
    %c0_4 = arith.constant 0 : index
    %5 = vector.load %arg6[%c0_3, %c0_4] : memref<8x128xf32, #tpu.memory_space<vmem>>, vector<8x128xf32>
    %6 = vector.shape_cast %4 : vector<256x128xf32> to vector<32x8x128xf32>
    %cst = arith.constant dense<0.000000e+00> : vector<8x128xf32>
    %7 = vector.multi_reduction <add>, %6, %cst [0] : vector<32x8x128xf32> to vector<8x128xf32>
    %8 = arith.addf %5, %7 : vector<8x128xf32>
    %c0_5 = arith.constant 0 : index
    %c0_6 = arith.constant 0 : index
    %9 = vector.load %arg6[%c0_5, %c0_6] : memref<8x128xf32, #tpu.memory_space<vmem>>, vector<8x128xf32>
    tpu.vector_store %arg6[%c0_5, %c0_6], %8 {strides = array<i32>} : memref<8x128xf32, #tpu.memory_space<vmem>>, vector<8x128xf32>,
    %c3_i32 = arith.constant 3 : i32
    %10 = arith.cmpi eq, %arg1, %c3_i32 : i32
    %11 = arith.extui %10 : i1 to i32
    %c0_i32_7 = arith.constant 0 : i32
    %12 = arith.cmpi ne, %11, %c0_i32_7 : i32
    scf.if %12 {
      %c0_8 = arith.constant 0 : index
      %c0_9 = arith.constant 0 : index
      %13 = vector.load %arg6[%c0_8, %c0_9] : memref<8x128xf32, #tpu.memory_space<vmem>>, vector<8x128xf32>
      %c0_10 = arith.constant 0 : index
      %c0_11 = arith.constant 0 : index
      %14 = vector.load %arg3[%c0_10, %c0_11] : memref<128x256xf32, #tpu.memory_space<vmem>>, vector<128x256xf32>
      %cst_12 = arith.constant dense<0.000000e+00> : vector<8x256xf32>
      %15 = tpu.matmul %13, %14, %cst_12 {dimension_numbers = #tpu.dot_dimension_numbers<[1], [0], [0], [1], [0, 0, 1, 1], [], []>} : vector<8x128xf32>, vector<128x256xf32>, vector<8x256xf32> -> vector<8x256xf32>
      %cst_13 = arith.constant dense<0.000000e+00> : vector<256xf32>
      %16 = vector.multi_reduction <add>, %15, %cst_13 [0] : vector<8x256xf32> to vector<256xf32>
      %17 = vector.shape_cast %16 : vector<256xf32> to vector<1x256xf32>
      %cst_14 = arith.constant 9.765625E-4 : f32
      %18 = vector.broadcast %cst_14 : f32 to vector<1x256xf32>
      %19 = arith.mulf %17, %18 : vector<1x256xf32>
      %c0_15 = arith.constant 0 : index
      %c0_16 = arith.constant 0 : index
      %20 = vector.load %arg4[%c0_15, %c0_16] : memref<1x256xf32, #tpu.memory_space<vmem>>, vector<1x256xf32>
      %21 = arith.addf %19, %20 : vector<1x256xf32>
      %c0_17 = arith.constant 0 : index
      %c0_18 = arith.constant 0 : index
      %c0_19 = arith.constant 0 : index
      %22 = vector.load %arg5[%c0_17, %c0_18, %c0_19] : memref<1x1x256xf32, #tpu.memory_space<vmem>>, vector<1x1x256xf32>
      %23 = vector.shape_cast %22 : vector<1x1x256xf32> to vector<1x256xf32>
      %24 = vector.shape_cast %21 : vector<1x256xf32> to vector<1x1x256xf32>
      tpu.vector_store %arg5[%c0_17, %c0_18, %c0_19], %24 {strides = array<i32>} : memref<1x1x256xf32, #tpu.memory_space<vmem>>, vector<1x1x256xf32>,
    } else {
    }
    return
  }
  func.func @transform_0(%arg0: i32, %arg1: i32) -> (i32, i32, i32) {
    %c0_i32 = arith.constant 0 : i32
    %c0_i32_0 = arith.constant 0 : i32
    return %arg0, %arg1, %c0_i32 : i32, i32, i32
  }
  func.func @transform_1(%arg0: i32, %arg1: i32) -> (i32, i32) {
    %c0_i32 = arith.constant 0 : i32
    %c0_i32_0 = arith.constant 0 : i32
    %c0_i32_1 = arith.constant 0 : i32
    return %c0_i32, %c0_i32_0 : i32, i32
  }
  func.func @transform_2(%arg0: i32, %arg1: i32) -> (i32, i32) {
    %c0_i32 = arith.constant 0 : i32
    %c0_i32_0 = arith.constant 0 : i32
    %c0_i32_1 = arith.constant 0 : i32
    return %c0_i32, %c0_i32_0 : i32, i32
  }
  func.func @transform_3(%arg0: i32, %arg1: i32) -> (i32, i32, i32) {
    %c0_i32 = arith.constant 0 : i32
    %c0_i32_0 = arith.constant 0 : i32
    %c0_i32_1 = arith.constant 0 : i32
    return %arg0, %c0_i32, %c0_i32_0 : i32, i32, i32
  }
}

</mosaic_0001>

<bundles_post_ra>
// kernel: tpu_custom_call.1
= control target key start
LH: loop header
LB: loop body
LE: loop exit
PB: predicated region body
PF: predicated region fallthrough
CT: control target
= control target key end

     0   :  { %s1254_s0 = inlined_call_operand.hbm [shape: f32[2,1024,128], index: 0, kind: input, shape index: {}]   ;;  %s1255_s1 = inlined_call_operand.hbm [shape: f32[128,256], index: 1, kind: input, shape index: {}]   ;;  %s1256_s2 = inlined_call_operand.vmem [shape: f32[1,256], index: 2, kind: input, shape index: {}]   ;;  %s1257_s3 = inlined_call_operand.hbm [shape: f32[2,1,256], index: 3, kind: output, shape index: {}]  }
   0x1   :  { %1270 = sst [smem:[#allocation17_spill]] %s1255_s1 }
   0x2   :  { %1271 = sst [smem:[#allocation18_spill]] %s1257_s3 }
   0x3   :  { %8 = vsyncpa [#allocation4], 0 }
   0x4   :  { %10 = vsyncpa [#allocation4 + $0x1], 0 }
   0x5   :  { %11 = vsyncpa [#allocation7], 0 }
   0x6   :  { %12 = vsyncpa [#allocation5], 0 }
   0x7   :  { %14 = vsyncpa [#allocation5 + $0x1], 0  ;;  %s949_s12 = smov 0   ;;  %s951_s13 = smov 0  }
   0x8   :  { %s953_s14 = smov 0   ;;  %s955_s15 = smov 0  }
   0x9   :  { %s957_s16 = smov 0   ;;  %s959_s17 = smov 0  }
   0xa   :  { %s961_s18 = smov 0   ;;  %s963_s19 = smov 0  }
   0xb   :  { %s965_s20 = smov 0   ;;  %s967_s21 = smov 0  }
   0xc   :  { %s969_s22 = smov 0  }
   0xd LB: > { %1272 = sst [smem:[#allocation12_spill]] %s877_s12  ;;  %s560_s23 = sadd.s32 4294967295, %s917_s22   ;;  %s917_s22 = sphi %s969_s22, %s20_s22   ;;  %s913_s21 = sphi %s967_s21, %s1306_s21   ;;  %s909_s20 = sphi %s965_s20, %s1305_s20   ;;  %s905_s19 = sphi %s963_s19, %s1304_s19   ;;  %s901_s18 = sphi %s961_s18, %s1303_s18   ;;  %s897_s17 = sphi %s959_s17, %s1302_s17   ;;  %s893_s16 = sphi %s957_s16, %s1301_s16   ;;  %s889_s15 = sphi %s955_s15, %s1300_s15   ;;  %s885_s14 = sphi %s953_s14, %s1299_s14   ;;  %s881_s13 = sphi %s951_s13, %s1298_s13   ;;  %s877_s12 = sphi %s949_s12, %s1297_s12  }
   0xe   : > { %s561_s24 = sadd.s32 4294967294, %s917_s22   ;;  %p54_p0 = scmp.ne.s32.totalorder %s893_s16, %s889_s15 }
   0xf   : > { %p1005_p1 = scmp.eq.s32.totalorder %s560_s23, 0  ;;  %s109_s26 = sadd.s32 1, %s885_s14 }
  0x10   : > { %p119_p2 = scmp.ne.s32.totalorder %s885_s14, %s881_s13  ;;  %p120_p4 = scmp.eq.s32.totalorder %s560_s23, 7 }
  0x11   : > { %s1273_s25 = scalar_select %p1005_p1, 1, 0 }
  0x12   : > { %p1014_p3 = por %p1005_p1, %p54_p0  ;;  %p125_p5 = scmp.ne.s32.totalorder %s881_s13, %s877_s12 }
  0x13   : > { %p126_p6 = scmp.eq.s32.totalorder %s561_s24, 7  ;;  %p1020_p7 = por %p120_p4, %p119_p2 }
  0x14   : > { %s1274_s27 = scalar_select %p1014_p3, 1, 0 }
  0x15   : > { %s1275_s28 = scalar_select %p1020_p7, 1, 0 }
  0x16   : > { %p562_p8 = scmp.ge.s32.totalorder %s917_s22, 1  ;;  %p1025_p9 = por %p126_p6, %p125_p5 }
  0x17   : > { %1276 = sst [smem:[#allocation13_spill]] %s1275_s28  ;;  %p133_p10 = scmp.lt.s32.totalorder %s917_s22, 9 }
  0x18   : > { %s1277_s29 = scalar_select %p1025_p9, 1, 0 }
  0x19   : > { %p1030_p11 = pnand %p562_p8, %p133_p10  ;;  %s919_s4 = smov [#allocation6]  }
  0x1a   : > { %1278 = sst [smem:[#allocation14_spill]] %s1277_s29  ;;  %s145_s5 = sshll.u32 %s919_s4, 4  ;;  %s146_s5 = int_to_ptr.vmem [resolvable:$true] %s145_s5 }
  0x1b   : > { %s1279_s30 = scalar_select %p1030_p11, 1, 0 }
  0x1c   : > { %p621_p12 = pneg %p1030_p11  ;;  %s1281_s1 = sld [smem:[#allocation17_spill]] }
  0x1e   : > { %p1038_p13 = pnand %p621_p12, %p1005_p1 }
  0x20   : > { %p735_p2 = pneg %p1038_p13 }
  0x22   : > { %s733_s9 = scalar_lea.hbm %s1281_s1, 4096 }
  0x23   : > { %p734_p0 = scmp.ne.s32.totalorder %s1281_s1, %s733_s9  ;;  %p740_p6 = scmp.lt.u32.totalorder %s733_s9, %s1281_s1 }
  0x25   : > { %p736_p4 = pnand %p735_p2, %p734_p0 }
  0x27   : > { %p737_p5 = pneg %p736_p4 }
  0x29   : > { %p742_p8 = pnand %p740_p6, %p737_p5 }
  0x2b   : > { %745 = shalt.err (!%p742_p8)
}
  0x2c   : > { %s746_s24 = scalar_lea.vmem %s146_s5, 4096  ;;  %p754_p7 = scmp.lt.s32.totalorder %s146_s5, %s146_s5 }
  0x2d   : > { %p747_p10 = scmp.ne.s32.totalorder %s146_s5, %s746_s24  ;;  %p755_p1 = scmp.lt.s32.totalorder %s746_s24, %s746_s24 }
  0x2f   : > { %p749_p12 = pnand %p747_p10, %p735_p2  ;;  %p756_p3 = por %p755_p1, %p754_p7 }
  0x31   : > { %p750_p9 = pneg %p749_p12 }
  0x33   : > { %p757_p11 = pnand %p756_p3, %p750_p9 }
  0x35   : > { %760 = shalt.err (!%p757_p11)
}
  0x36   : > { %s920_s4 = smov 256   ;;  %s921_s7 = smov 16  }
  0x37   : > { %624 = dma.hbm_to_vmem [thread:$0]  (!%p1038_p13), %s1281_s1, 4096, %s146_s5, [#allocation7], %s920_s4, %s920_s4, %s921_s7  }
  0x38   : > { %s29_s10 = sadd.s32 1, %s909_s20  ;;  %s32_s11 = sadd.s32 1, %s913_s21 }
  0x39   : > { %p30_p1 = scmp.ge.s32.totalorder %s29_s10, 4  ;;  %s41_s15 = sadd.s32 1, %s897_s17 }
  0x3a   : > { %p48_p3 = scmp.ne.s32.totalorder %s897_s17, %s893_s16  ;;  %p49_p7 = scmp.eq.s32.totalorder %s917_s22, 0 }
  0x3b   : > { %s1308_s10 = smov (%p30_p1, %s29_s10), 0  ;;  %s1310_s11 = smov (!%p30_p1, %s32_s11), %s913_s21 }
  0x3c   : > { %1282 = sst [smem:[#allocation15_spill]] %s1308_s10  ;;  %s37_s6 = ssub.s32 %s909_s20, %s1308_s10 }
  0x3d   : > { %p34_p9 = scmp.ge.s32.totalorder %s1310_s11, 2  ;;  %p634_p11 = scmp.lt.s32.totalorder %s917_s22, 8 }
  0x3e   : > { %p1070_p13 = por %p49_p7, %p48_p3  ;;  %s162_s23 = sand.u32 1, %s897_s17  }
  0x3f   : > { %s1312_s11 = smov (%p34_p9, %s1310_s11), 0  ;;  %s565_s24 = sshll.u32 %s162_s23, 8 }
  0x40   : > { %1284 = sst [smem:[#allocation16_spill]] %s1312_s11  ;;  %s36_s4 = ssub.s32 %s913_s21, %s1312_s11 }
  0x41   : > { %s38_s7 = sor.u32 %s37_s6, %s36_s4  ;;  %p107_p0 = scmp.eq.s32.totalorder %s36_s4, 0 }
  0x42   : > { %p39_p2 = scmp.eq.s32.totalorder %s38_s7, 0  ;;  %s566_s8 = sshll.u32 %s909_s20, 5 }
  0x43   : > { %s1083_s9 = scalar_select %p107_p0, %s885_s14, %s109_s26  }
  0x44   : > { %s1086_s1 = scalar_select %p39_p2, %s897_s17, %s41_s15  }
  0x45   : > { %s567_s10 = sshll.u32 %s913_s21, 7  ;;  %s166_s29 = scalar_lea.vmem [#allocation3], %s565_s24 }
  0x46   : > { %s175_s12 = sshll.u32 %s166_s29, 4  ;;  %s172_s3 = sadd.s32 %s567_s10, %s566_s8  ;;  %s1089_s12 = int_to_ptr.vmem [resolvable:$true] %s175_s12 }
  0x47   : > { %s568_s28 = sshll.u32 %s172_s3, 7  ;;  %p1095_p4 = pnand %p634_p11, %p1070_p13 }
  0x48   : > { %s1102_s26 = scalar_lea.hbm %s1254_s0, %s568_s28  ;;  %s1104_s29 = scalar_lea.sflag [#allocation4], %s162_s23 }
  0x49   : > { %s761_s3 = scalar_lea.hbm %s1102_s26, 4096  ;;  %p763_p6 = pneg %p1095_p4 }
  0x4a   : > { %p762_p5 = scmp.ne.s32.totalorder %s1102_s26, %s761_s3  ;;  %s766_s5 = scalar_lea.hbm %s1254_s0, 32768 }
  0x4b   : > { %p767_p12 = scmp.lt.u32.totalorder %s1102_s26, %s1254_s0  ;;  %p768_p1 = scmp.lt.u32.totalorder %s766_s5, %s761_s3 }
  0x4c   : > { %p764_p8 = pnand %p763_p6, %p762_p5  ;;  %p770_p7 = scmp.lt.u32.totalorder %s761_s3, %s1102_s26 }
  0x4d   : > { %p769_p3 = por %p768_p1, %p767_p12 }
  0x4e   : > { %p765_p10 = pneg %p764_p8 }
  0x4f   : > { %p771_p9 = por %p770_p7, %p769_p3 }
  0x51   : > { %p772_p11 = pnand %p771_p9, %p765_p10 }
  0x53   : > { %775 = shalt.err (!%p772_p11)
}
  0x54   : > { %s776_s23 = scalar_lea.vmem %s1089_s12, 4096  ;;  %s922_s7 = smov [#allocation3]  }
  0x55   : > { %p777_p13 = scmp.ne.s32.totalorder %s1089_s12, %s776_s23  ;;  %s781_s8 = sshll.u32 %s922_s7, 4  ;;  %s782_s8 = int_to_ptr.vmem [resolvable:$false] %s781_s8 }
  0x56   : > { %s783_s6 = scalar_lea.vmem %s782_s8, 8192  ;;  %p784_p5 = scmp.lt.s32.totalorder %s1089_s12, %s782_s8 }
  0x57   : > { %p779_p0 = pnand %p777_p13, %p763_p6  ;;  %p785_p8 = scmp.lt.s32.totalorder %s783_s6, %s776_s23 }
  0x59   : > { %p780_p2 = pneg %p779_p0  ;;  %p786_p12 = por %p785_p8, %p784_p5 }
  0x5b   : > { %p787_p1 = pnand %p786_p12, %p780_p2 }
  0x5d   : > { %790 = shalt.err (!%p787_p1)
}
  0x5e   : > { %s923_s4 = smov 128   ;;  %s924_s3 = smov 8  }
  0x5f   : > { %628 = dma.hbm_to_vmem [thread:$0]  (!%p1095_p4), %s1102_s26, 4096, %s1089_s12, %s1104_s29, %s923_s4, %s923_s4, %s924_s3  }
  0x60   : > { %p1286_p6 = scmp.ne.s32.totalorder %s1279_s30, 0 }
  0x61   : > { %s189_s10 = sand.u32 (!%p1286_p6), 1, %s893_s16   ;;  %p1287_p10 = scmp.ne.s32.totalorder (!%p1286_p6), %s1274_s27, 0 }
  0x62   : > { %187 = sbr.rel (%p1286_p6) target bundleno = 454 (0x1c6), region = 32  ;;  %s570_s15 = sshll.u32 (!%p1286_p6), %s189_s10, 8 }
  0x63   : > { %s190_s5 = scalar_lea.sflag (!%p1286_p6), [#allocation4], %s189_s10  ;;  %s1135_s28 = scalar_lea.vmem (!%p1286_p6), [#allocation3], %s570_s15 }
  0x69   : > { %864 = dma.done.wait (%p1287_p10), %s190_s5, 4096  }
  0x6a   : > { %866 = vsyncadd (%p1287_p10), %s190_s5, 4294963200  ;;  %p1288_p3 = scmp.ne.s32.totalorder %s1273_s25, 0 }
  0x6c   : > { %868 = dma.done.wait (%p1288_p3), [#allocation7], 4096  }
  0x6d   : > { %870 = vsyncadd (%p1288_p3), [#allocation7], 4294963200  ;;  %s217_s12 = sand.u32 1, %s881_s13   ;;  %p573_p4 = scmp.ne.s32.totalorder %s901_s18, 0 }
  0x6e   : > { %s1148_s30 = sshll.u32 %s217_s12, 1  ;;  %v925_v0 = vmov (!%p573_p4), 0.0  }
  0x6f   : > { %s219_s11 = scalar_lea.vmem [#allocation8], %s1148_s30  ;;  %224 = sbr.rel (%p573_p4) target bundleno = 118 (0x76), region = 44  ;;  %225 = vst [vmem:[#allocation2] sm:$0xff] (!%p573_p4), %v925_v0 }
  0x76 PF: > { %v226_v1 = vld [vmem:[%s1135_s28] sm:$0xff]  ;;  %v227_v2 = vld [vmem:[%s1135_s28 + $0x8] sm:$0xff]  ;;  %v228_v3 = vld [vmem:[%s1135_s28 + $0x10] sm:$0xff]  ;;  %p574_p7 = scmp.ne.s32.totalorder %s901_s18, 3 }
  0x77   : > { %v259_v4 = vadd.f32 %v227_v2, %v226_v1  ;;  %v229_v5 = vld [vmem:[%s1135_s28 + $0x18] sm:$0xff]  ;;  %v230_v7 = vld [vmem:[%s1135_s28 + $0x20] sm:$0xff]  ;;  %v231_v9 = vld [vmem:[%s1135_s28 + $0x28] sm:$0xff] }
  0x78   : > { %v232_v11 = vld [vmem:[%s1135_s28 + $0x30] sm:$0xff]  ;;  %v233_v13 = vld [vmem:[%s1135_s28 + $0x38] sm:$0xff]  ;;  %v234_v15 = vld [vmem:[%s1135_s28 + $0x40] sm:$0xff] }
  0x79   : > { %v260_v6 = vadd.f32 %v259_v4, %v228_v3  ;;  %v235_v17 = vld [vmem:[%s1135_s28 + $0x48] sm:$0xff]  ;;  %v236_v19 = vld [vmem:[%s1135_s28 + $0x50] sm:$0xff]  ;;  %v237_v21 = vld [vmem:[%s1135_s28 + $0x58] sm:$0xff] }
  0x7a   : > { %v238_v23 = vld [vmem:[%s1135_s28 + $0x60] sm:$0xff]  ;;  %v239_v25 = vld [vmem:[%s1135_s28 + $0x68] sm:$0xff]  ;;  %v240_v27 = vld [vmem:[%s1135_s28 + $0x70] sm:$0xff] }
  0x7b   : > { %v261_v8 = vadd.f32 %v260_v6, %v229_v5  ;;  %v241_v29 = vld [vmem:[%s1135_s28 + $0x78] sm:$0xff]  ;;  %v242_v31 = vld [vmem:[%s1135_s28 + $0x80] sm:$0xff]  ;;  %v243_v33 = vld [vmem:[%s1135_s28 + $0x88] sm:$0xff] }
  0x7c   : > { %v244_v35 = vld [vmem:[%s1135_s28 + $0x90] sm:$0xff]  ;;  %v245_v37 = vld [vmem:[%s1135_s28 + $0x98] sm:$0xff]  ;;  %v246_v39 = vld [vmem:[%s1135_s28 + $0xa0] sm:$0xff] }
  0x7d   : > { %v262_v10 = vadd.f32 %v261_v8, %v230_v7  ;;  %v247_v41 = vld [vmem:[%s1135_s28 + $0xa8] sm:$0xff]  ;;  %v248_v43 = vld [vmem:[%s1135_s28 + $0xb0] sm:$0xff]  ;;  %v249_v45 = vld [vmem:[%s1135_s28 + $0xb8] sm:$0xff] }
  0x7e   : > { %v250_v47 = vld [vmem:[%s1135_s28 + $0xc0] sm:$0xff]  ;;  %v251_v49 = vld [vmem:[%s1135_s28 + $0xc8] sm:$0xff]  ;;  %v252_v51 = vld [vmem:[%s1135_s28 + $0xd0] sm:$0xff] }
  0x7f   : > { %v263_v12 = vadd.f32 %v262_v10, %v231_v9  ;;  %v253_v53 = vld [vmem:[%s1135_s28 + $0xd8] sm:$0xff]  ;;  %v254_v55 = vld [vmem:[%s1135_s28 + $0xe0] sm:$0xff]  ;;  %v255_v57 = vld [vmem:[%s1135_s28 + $0xe8] sm:$0xff]  ;;  %v926_v9 = vmov (!%p574_p7), 0.0  }
  0x80   : > { %v256_v59 = vld [vmem:[%s1135_s28 + $0xf0] sm:$0xff]  ;;  %v257_v61 = vld [vmem:[%s1135_s28 + $0xf8] sm:$0xff]  ;;  %v298_v2 = vld [vmem:[#allocation6 + $0x8] sm:$0xff] (!%p574_p7)  ;;  %393 = vmatprep.mubr.f32.mxu0 (!%p574_p7), %v926_v9 }
  0x81   : > { %v264_v14 = vadd.f32 %v263_v12, %v232_v11  ;;  %v258_v63 = vld [vmem:[#allocation2] sm:$0xff]  ;;  %v297_v4 = vld [vmem:[#allocation6] sm:$0xff] (!%p574_p7)  ;;  %v299_v6 = vld [vmem:[#allocation6 + $0x10] sm:$0xff] (!%p574_p7) }
  0x82   : > { %v300_v3 = vld [vmem:[#allocation6 + $0x18] sm:$0xff] (!%p574_p7)  ;;  %v302_v7 = vld [vmem:[#allocation6 + $0x28] sm:$0xff] (!%p574_p7)  ;;  %v583_v10 = vpack.c.bf16 (!%p574_p7), %v299_v6, %v297_v4  ;;  %v301_v12 = vld [vmem:[#allocation6 + $0x20] sm:$0xff] (!%p574_p7) }
  0x83   : > { %v265_v16 = vadd.f32 %v264_v14, %v233_v13  ;;  %v581_v5 = vpack.c.bf16 (!%p574_p7), %v300_v3, %v298_v2  ;;  %v304_v8 = vld [vmem:[#allocation6 + $0x38] sm:$0xff] (!%p574_p7)  ;;  %v303_v13 = vld [vmem:[#allocation6 + $0x30] sm:$0xff] (!%p574_p7)  ;;  %v306_v14 = vld [vmem:[#allocation6 + $0x48] sm:$0xff] (!%p574_p7)  ;;  %v927_v3 = vmov (!%p574_p7), 1966171168  }
  0x84   : > { %v585_v11 = vpack.c.bf16 (!%p574_p7), %v304_v8, %v302_v7  ;;  %v432_v4 = vunpack.c.l.s4 (!%p574_p7), %v927_v3 }
  0x85   : > { %v266_v18 = vadd.f32 %v265_v16, %v234_v15  ;;  %582 = vmatprep.subr.bf16.mxu0 (!%p574_p7), %v581_v5  ;;  %v308_v15 = vld [vmem:[#allocation6 + $0x58] sm:$0xff] (!%p574_p7)  ;;  %v587_v16 = vpack.c.bf16 (!%p574_p7), %v303_v13, %v301_v12 }
  0x86   : > { %584 = vmatpush1.bf16.msra.mxu0 (!%p574_p7), %v583_v10 }
  0x87   : > { %v267_v20 = vadd.f32 %v266_v18, %v235_v17  ;;  %586 = vmatprep.subr.bf16.mxu0 (!%p574_p7), %v585_v11  ;;  %v589_v17 = vpack.c.bf16 (!%p574_p7), %v308_v15, %v306_v14  ;;  %v305_v18 = vld [vmem:[#allocation6 + $0x40] sm:$0xff] (!%p574_p7)  ;;  %v433_v11 = vunpack.c.0.s8 (!%p574_p7), %v432_v4 }
  0x89   : > { %v268_v22 = vadd.f32 %v267_v20, %v236_v19  ;;  %v307_v19 = vld [vmem:[#allocation6 + $0x50] sm:$0xff] (!%p574_p7)  ;;  %v310_v20 = vld [vmem:[#allocation6 + $0x68] sm:$0xff] (!%p574_p7) }
  0x8a   : > { %588 = vmatpush1.bf16.msra.mxu0 (!%p574_p7), %v587_v16 }
  0x8b   : > { %v269_v24 = vadd.f32 %v268_v22, %v237_v21  ;;  %v312_v21 = vld [vmem:[#allocation6 + $0x78] sm:$0xff] (!%p574_p7)  ;;  %v591_v22 = vpack.c.bf16 (!%p574_p7), %v307_v19, %v305_v18  ;;  %590 = vmatprep.subr.bf16.mxu0 (!%p574_p7), %v589_v17 }
  0x8d   : > { %v270_v26 = vadd.f32 %v269_v24, %v238_v23  ;;  %v593_v23 = vpack.c.bf16 (!%p574_p7), %v312_v21, %v310_v20  ;;  %v309_v24 = vld [vmem:[#allocation6 + $0x60] sm:$0xff] (!%p574_p7) }
  0x8e   : > { %592 = vmatpush1.bf16.msra.mxu0 (!%p574_p7), %v591_v22 }
  0x8f   : > { %v271_v28 = vadd.f32 %v270_v26, %v239_v25  ;;  %v311_v25 = vld [vmem:[#allocation6 + $0x70] sm:$0xff] (!%p574_p7)  ;;  %v314_v26 = vld [vmem:[#allocation6 + $0x88] sm:$0xff] (!%p574_p7)  ;;  %594 = vmatprep.subr.bf16.mxu0 (!%p574_p7), %v593_v23 }
  0x91   : > { %v272_v30 = vadd.f32 %v271_v28, %v240_v27  ;;  %v316_v27 = vld [vmem:[#allocation6 + $0x98] sm:$0xff] (!%p574_p7)  ;;  %v595_v28 = vpack.c.bf16 (!%p574_p7), %v311_v25, %v309_v24 }
  0x93   : > { %v273_v32 = vadd.f32 %v272_v30, %v241_v29  ;;  %v597_v29 = vpack.c.bf16 (!%p574_p7), %v316_v27, %v314_v26  ;;  %v313_v30 = vld [vmem:[#allocation6 + $0x80] sm:$0xff] (!%p574_p7)  ;;  %596 = vmatpush1.bf16.msra.mxu0 (!%p574_p7), %v595_v28 }
  0x95   : > { %v274_v34 = vadd.f32 %v273_v32, %v242_v31  ;;  %v315_v31 = vld [vmem:[#allocation6 + $0x90] sm:$0xff] (!%p574_p7)  ;;  %v318_v32 = vld [vmem:[#allocation6 + $0xa8] sm:$0xff] (!%p574_p7)  ;;  %598 = vmatprep.subr.bf16.mxu0 (!%p574_p7), %v597_v29 }
  0x97   : > { %v275_v36 = vadd.f32 %v274_v34, %v243_v33  ;;  %v320_v33 = vld [vmem:[#allocation6 + $0xb8] sm:$0xff] (!%p574_p7)  ;;  %v599_v34 = vpack.c.bf16 (!%p574_p7), %v315_v31, %v313_v30 }
  0x99   : > { %v276_v38 = vadd.f32 %v275_v36, %v244_v35  ;;  %v601_v35 = vpack.c.bf16 (!%p574_p7), %v320_v33, %v318_v32  ;;  %v317_v36 = vld [vmem:[#allocation6 + $0xa0] sm:$0xff] (!%p574_p7)  ;;  %600 = vmatpush1.bf16.msra.mxu0 (!%p574_p7), %v599_v34 }
  0x9b   : > { %v277_v40 = vadd.f32 %v276_v38, %v245_v37  ;;  %v319_v37 = vld [vmem:[#allocation6 + $0xb0] sm:$0xff] (!%p574_p7)  ;;  %v322_v38 = vld [vmem:[#allocation6 + $0xc8] sm:$0xff] (!%p574_p7)  ;;  %602 = vmatprep.subr.bf16.mxu0 (!%p574_p7), %v601_v35 }
  0x9d   : > { %v278_v42 = vadd.f32 %v277_v40, %v246_v39  ;;  %v324_v39 = vld [vmem:[#allocation6 + $0xd8] sm:$0xff] (!%p574_p7)  ;;  %v603_v40 = vpack.c.bf16 (!%p574_p7), %v319_v37, %v317_v36 }
  0x9f   : > { %v279_v44 = vadd.f32 %v278_v42, %v247_v41  ;;  %v605_v41 = vpack.c.bf16 (!%p574_p7), %v324_v39, %v322_v38  ;;  %v321_v42 = vld [vmem:[#allocation6 + $0xc0] sm:$0xff] (!%p574_p7)  ;;  %604 = vmatpush1.bf16.msra.mxu0 (!%p574_p7), %v603_v40 }
  0xa1   : > { %v280_v46 = vadd.f32 %v279_v44, %v248_v43  ;;  %v323_v43 = vld [vmem:[#allocation6 + $0xd0] sm:$0xff] (!%p574_p7)  ;;  %v326_v44 = vld [vmem:[#allocation6 + $0xe8] sm:$0xff] (!%p574_p7)  ;;  %606 = vmatprep.subr.bf16.mxu0 (!%p574_p7), %v605_v41 }
  0xa3   : > { %v281_v48 = vadd.f32 %v280_v46, %v249_v45  ;;  %v328_v45 = vld [vmem:[#allocation6 + $0xf8] sm:$0xff] (!%p574_p7)  ;;  %v607_v46 = vpack.c.bf16 (!%p574_p7), %v323_v43, %v321_v42 }
  0xa5   : > { %v282_v50 = vadd.f32 %v281_v48, %v250_v47  ;;  %v609_v47 = vpack.c.bf16 (!%p574_p7), %v328_v45, %v326_v44  ;;  %v325_v48 = vld [vmem:[#allocation6 + $0xe0] sm:$0xff] (!%p574_p7)  ;;  %608 = vmatpush1.bf16.msra.mxu0 (!%p574_p7), %v607_v46 }
  0xa7   : > { %v283_v52 = vadd.f32 %v282_v50, %v251_v49  ;;  %v327_v49 = vld [vmem:[#allocation6 + $0xf0] sm:$0xff] (!%p574_p7)  ;;  %610 = vmatprep.subr.bf16.mxu0 (!%p574_p7), %v609_v47 }
  0xa8   : > { %v611_v50 = vpack.c.bf16 (!%p574_p7), %v327_v49, %v325_v48 }
  0xa9   : > { %v284_v54 = vadd.f32 %v283_v52, %v252_v51  ;;  %v416_v52 = vlaneseq (!%p574_p7) }
  0xaa   : > { %612 = vmatpush1.bf16.msra.mxu0 (!%p574_p7), %v611_v50 }
  0xab   : > { %v285_v56 = vadd.f32 %v284_v54, %v253_v53  ;;  %vm448_vm0 = vcmp.lt.s32.totalorder (!%p574_p7), %v416_v52, 256 }
  0xad   : > { %v286_v58 = vadd.f32 %v285_v56, %v254_v55 }
  0xaf   : > { %v287_v60 = vadd.f32 %v286_v58, %v255_v57  ;;  %v417_v58 = vshrl.u32 (!%p574_p7), %v416_v52, 7 }
  0xb1   : > { %v288_v62 = vadd.f32 %v287_v60, %v256_v59  ;;  %295 = sbr.rel (%p574_p7) target bundleno = 427 (0x1ab), region = 48  ;;  %v422_v2 = vsub.s32 (!%p574_p7), 1, %v417_v58  ;;  %v436_v16 = vsub.s32 (!%p574_p7), %v433_v11, %v417_v58 }
  0xb3   : > { %v289_v0 = vadd.f32 %v288_v62, %v257_v61 }
  0xb5   : > { %v290_v1 = vadd.f32 %v289_v0, %v258_v63  ;;  %v418_v63 = vsub.s32 (!%p574_p7), 0, %v417_v58  ;;  %v414_v0 = vld [vmem:[%s1256_s2] sm:$0x3] (!%p574_p7) }
  0xb6   : > { %v423_v10 = vrot.slane (!%p574_p7), %v414_v0, %v422_v2 }
  0xb7   : > { %291 = vst [vmem:[#allocation2] sm:$0xff] %v290_v1  ;;  %v419_v8 = vrot.slane (!%p574_p7), %v414_v0, %v418_v63 }
  0xbe   : > { %v296_v51 = vld [vmem:[#allocation2] sm:$0xff] }
  0xbf   : > { %394 = vmatmul.mubr.f32.vlgmr.msra.gmra.mrb[0].mxu0 %v296_v51 }
 0x192   : > { %v395_v53 = vpop.f32.mrb[0].mxu0 }
 0x193   : > { %v400_v54 = vrot.slane %v395_v53, 4  ;;  %v397_v55 = vpop.f32.mrb[1].mxu0 }
 0x194   : > { %v406_v56 = vrot.slane %v397_v55, 4 }
 0x195   : > { %v401_v57 = vadd.f32 %v400_v54, %v395_v53 }
 0x196   : > { %v407_v59 = vadd.f32 %v406_v56, %v397_v55 }
 0x197   : > { %v402_v60 = vrot.slane %v401_v57, 2 }
 0x198   : > { %v408_v61 = vrot.slane %v407_v59, 2 }
 0x199   : > { %v403_v62 = vadd.f32 %v402_v60, %v401_v57 }
 0x19a   : > { %v409_v1 = vadd.f32 %v408_v61, %v407_v59 }
 0x19b   : > { %v404_v5 = vrot.slane %v403_v62, 1 }
 0x19c   : > { %v410_v6 = vrot.slane %v409_v1, 1 }
 0x19d   : > { %v405_v7 = vadd.f32 %v404_v5, %v403_v62 }
 0x19e   : > { %v411_v9 = vadd.f32 %v410_v6, %v409_v1 }
 0x19f   : > { %v412_v12 = vmul.f32 0.0009765625, %v405_v7 }
 0x1a0   : > { %v413_v13 = vmul.f32 0.0009765625, %v411_v9 }
 0x1a1   : > { %v426_v14 = vadd.f32 %v419_v8, %v412_v12 }
 0x1a2   : > { %v427_v15 = vadd.f32 %v423_v10, %v413_v13 }
 0x1a4   : > { %v430_v17 = vcombine.low %v426_v14, %v427_v15 }
 0x1a6   : > { %v437_v18 = vrot.slane %v430_v17, %v436_v16 }
 0x1a8   : > { %v444_v19 = vrot.slane %v437_v18, %v436_v16 }
 0x1aa   : > { %450 = vst.msk [vmem:[%s219_s11] sm:$0x3] %vm448_vm0, %v444_v19 }
 0x1ab PF: > { %s1289_s27 = sld [smem:[#allocation13_spill]]  ;;  %s580_s26 = sshll.u32 %s905_s19, 5 }
 0x1ac   : > { %s1290_s23 = sld [smem:[#allocation18_spill]]  ;;  %s466_s8 = sshll.u32 %s219_s11, 4  ;;  %s467_s8 = int_to_ptr.vmem [resolvable:$true] %s466_s8 }
 0x1ad   : > { %s452_s6 = scalar_lea.sflag [#allocation5], %s217_s12  ;;  %s791_s4 = scalar_lea.vmem %s467_s8, 32 }
 0x1ae   : > { %p792_p9 = scmp.ne.s32.totalorder %s467_s8, %s791_s4  ;;  %s928_s3 = smov [#allocation8]  }
 0x1af   : > { %s795_s10 = sshll.u32 %s928_s3, 4  ;;  %s796_s10 = int_to_ptr.vmem [resolvable:$false] %s795_s10 }
 0x1b0   : > { %s797_s15 = scalar_lea.vmem %s796_s10, 64  ;;  %p798_p2 = scmp.lt.s32.totalorder %s467_s8, %s796_s10 }
 0x1b1   : > { %p1291_p11 = scmp.ne.s32.totalorder %s1289_s27, 0  ;;  %p799_p5 = scmp.lt.s32.totalorder %s797_s15, %s791_s4 }
 0x1b2   : > { %s1194_s7 = scalar_lea.hbm %s1290_s23, %s580_s26 }
 0x1b3   : > { %p793_p13 = pnand %p792_p9, %p1291_p11  ;;  %p800_p8 = por %p799_p5, %p798_p2 }
 0x1b5   : > { %p794_p0 = pneg %p793_p13 }
 0x1b7   : > { %p801_p12 = pnand %p800_p8, %p794_p0 }
 0x1b9   : > { %804 = shalt.err (!%p801_p12)
}
 0x1ba   : > { %s805_s19 = scalar_lea.hbm %s1194_s7, 32  ;;  %s809_s12 = scalar_lea.hbm %s1290_s23, 64 }
 0x1bb   : > { %p806_p1 = scmp.ne.s32.totalorder %s1194_s7, %s805_s19  ;;  %p810_p3 = scmp.lt.u32.totalorder %s1194_s7, %s1290_s23 }
 0x1bc   : > { %p811_p4 = scmp.lt.u32.totalorder %s809_s12, %s805_s19  ;;  %p813_p9 = scmp.lt.u32.totalorder %s805_s19, %s1194_s7 }
 0x1bd   : > { %p807_p6 = pnand %p806_p1, %p1291_p11 }
 0x1be   : > { %p812_p7 = por %p811_p4, %p810_p3 }
 0x1bf   : > { %p808_p10 = pneg %p807_p6 }
 0x1c0   : > { %p814_p13 = por %p813_p9, %p812_p7 }
 0x1c2   : > { %p815_p0 = pnand %p814_p13, %p808_p10 }
 0x1c4   : > { %818 = shalt.err (!%p815_p0)
}
 0x1c5   : > { %619 = dma.vmem_to_hbm [thread:$0]  (%p1291_p11), %s467_s8, 32, %s1194_s7, %s452_s6  }
 0x1c6 PF: > { %s1292_s18 = sld [smem:[#allocation12_spill]]  ;;  %s1293_s25 = sld [smem:[#allocation14_spill]] }
 0x1c7   : > { %p636_p2 = scmp.ge.s32.totalorder %s917_s22, 2 }
 0x1cc   : > { %s478_s26 = sand.u32 1, %s1292_s18   ;;  %p1294_p5 = scmp.ne.s32.totalorder %s1293_s25, 0 }
 0x1cd   : > { %s479_s29 = scalar_lea.sflag [#allocation5], %s478_s26 }
 0x1ce   : > { %p630_p8 = pnand %p636_p2, %p1294_p5 }
 0x1d0   : > { %872 = dma.done.wait (!%p630_p8), %s479_s29, 32  }
 0x1d1   : > { %874 = vsyncadd (!%p630_p8), %s479_s29, 4294967264  ;;  %s20_s22 = sadd.s32 1, %s917_s22   ;;  %s1295_s27 = sld [smem:[#allocation15_spill]] }
 0x1d2   : > { %p17_p12 = scmp.ge.s32.totalorder %s20_s22, 10   ;;  %s1296_s24 = sld [smem:[#allocation16_spill]] }
 0x1d3   : > { %s1297_s12 = smov %s881_s13  ;;  %s1298_s13 = smov %s885_s14 }
 0x1d4   : > { %s1299_s14 = smov %s1083_s9  ;;  %s1300_s15 = smov %s893_s16 }
 0x1d5   : > { %s1301_s16 = smov %s897_s17  ;;  %s1302_s17 = smov %s1086_s1 }
 0x1d6   : > { %s1303_s18 = smov %s909_s20  ;;  %s1304_s19 = smov %s913_s21 }
 0x1d7   : > { %s1305_s20 = smov %s1295_s27  ;;  %19 = sbr.rel (!%p17_p12) target bundleno = 13 (0xd), region = 89 }
 0x1d8   : > { %s1306_s21 = smov %s1296_s24 }
 0x1de   :  { %484 = vsyncpa [#allocation4], 1 }
 0x1df   :  { %486 = vsyncpa [#allocation4 + $0x1], 1 }
 0x1e0   :  { %487 = vsyncpa [#allocation7], 1 }
 0x1e1   :  { %488 = vsyncpa [#allocation5], 1 }
 0x1e2   :  { %490 = vsyncpa [#allocation5 + $0x1], 1 }

</bundles_post_ra>
